<compile_context>
chip_gen: v5e
topology: v5e:2x2
jax: 0.10.0
libtpu: 0.0.40
codegen_flags: <defaults>
</compile_context>

<pallas_src>
import jax
import jax.numpy as jnp
from jax import lax
from jax.experimental import pallas as pl
from jax.experimental.pallas import tpu as pltpu


def _round_up(n, m):
    return ((n + m - 1) // m) * m


def _mlp_kernel(x_ref, w1_ref, b1_ref, w2_ref, b2_ref, w3_ref, b3_ref, o_ref):
    w1 = w1_ref[...]                                    # (h1, d_in), compute dtype
    xb = x_ref[...].astype(w1.dtype)                    # (tb, d_in): cast fused in-kernel
    # Layer 1: h = W1 @ x^T via a contraction on the d_in axes of BOTH operands, so
    # no explicit transpose of x materializes (Dropout = identity in eval mode).
    h = lax.dot_general(w1, xb, (((1,), (1,)), ((), ())),
                        preferred_element_type=jnp.float32)            # (h1, tb)
    h = jnp.maximum(h + b1_ref[...], 0.0)               # f32 bias + ReLU (VPU)
    # Layer 2: W2 @ h + b2, ReLU.
    h = jnp.dot(w2_ref[...], h.astype(w1.dtype),
                preferred_element_type=jnp.float32)                    # (h2, tb)
    h = jnp.maximum(h + b2_ref[...], 0.0)
    # Output head (out_features == 1): VPU multiply + sublane (XLU) reduction instead
    # of an N=1 MXU matmul; result is already the lane-dense (1, tb) output row.
    w3 = w3_ref[...].astype(jnp.float32)                               # (h2, 1)
    o = jnp.sum(h * w3, axis=0, keepdims=True) + b3_ref[0, 0]          # (1, tb)
    o_ref[...] = o.astype(o_ref.dtype)


def pool_prediction_forward(x, params, *, compute_dtype=jnp.bfloat16, tb_max=1024):
    """Fused forward of the weight-normed MLP head.

    x: (B, d_in), any float dtype (DMA'd as-is; cast to compute_dtype in-kernel).
    params: [(W (out,in) f32, b (out,) f32), ...] with weight_norm already folded in.
    Returns a 1-tuple ((B, 1) f32,), matching the torch module.
    compute_dtype=bfloat16 (default) uses the native bf16 MXU path with f32 accumulation.
    """
    (w1, b1), (w2, b2), (w3, b3) = params
    B, d_in = x.shape
    h1, h2 = w1.shape[0], w2.shape[0]
    assert w1.shape == (h1, d_in) and w2.shape == (h2, h1) and w3.shape == (1, h2)

    # Lane-axis (batch) tiling.  Small B: one grid step (per-step overhead dominates).
    # Mid-size B: two ~equal lane-aligned steps so both v7x TensorCores get work.
    # Large B: tb_max-wide tiles; the partial tail block is masked by Pallas.
    tb_max = max(128, (int(tb_max) // 128) * 128)
    if B <= 256:
        tb = B
    elif B <= 2 * tb_max:
        tb = _round_up(pl.cdiv(B, 2), 128)
    else:
        tb = tb_max
    grid = (pl.cdiv(B, tb),)

    # Weights in compute dtype (tiny; resident across grid steps), biases in f32.
    w1c = w1.astype(compute_dtype)                     # (h1, d_in)
    w2c = w2.astype(compute_dtype)                     # (h2, h1)
    w3c = w3.T.astype(compute_dtype)                   # (h2, 1) column for the VPU head
    b1c = b1.reshape(h1, 1).astype(jnp.float32)
    b2c = b2.reshape(h2, 1).astype(jnp.float32)
    b3c = b3.reshape(1, 1).astype(jnp.float32)         # scalar -> SMEM

    x_item = x.dtype.itemsize
    w_item = jnp.dtype(compute_dtype).itemsize
    w_bytes = (w1c.size + w2c.size + w3c.size) * w_item + (h1 + h2) * 4
    io_tile_bytes = tb * d_in * x_item + tb * 4
    working_set = 2 * (w_bytes + io_tile_bytes)        # BlockSpec double-buffering
    # Cap at 48 MiB: leaves compiler headroom under v7x's 64 MiB physical VMEM
    # (v5e/v6e have 128 MiB, so the cap never hurts them).
    vmem_limit = int(min(48 << 20, max(16 << 20, 4 * working_set)))

    flops = 2 * B * (d_in * h1 + h1 * h2 + h2)
    bytes_accessed = int(x.size * x_item + w_bytes + B * 4)

    out = pl.pallas_call(
        _mlp_kernel,
        out_shape=jax.ShapeDtypeStruct((1, B), jnp.float32),
        grid=grid,
        in_specs=[
            pl.BlockSpec((tb, d_in), lambda i: (i, 0)),   # x in its native layout
            pl.BlockSpec((h1, d_in), lambda i: (0, 0)),   # W1 (resident)
            pl.BlockSpec((h1, 1), lambda i: (0, 0)),      # b1
            pl.BlockSpec((h2, h1), lambda i: (0, 0)),     # W2 (resident)
            pl.BlockSpec((h2, 1), lambda i: (0, 0)),      # b2
            pl.BlockSpec((h2, 1), lambda i: (0, 0)),      # w3 column (head)
            pl.BlockSpec(memory_space=pltpu.MemorySpace.SMEM),  # b3 scalar
        ],
        out_specs=pl.BlockSpec((1, tb), lambda i: (0, i)),  # lane-dense output row
        compiler_params=pltpu.CompilerParams(
            dimension_semantics=("parallel",),
            vmem_limit_bytes=vmem_limit,
        ),
        cost_estimate=pl.CostEstimate(
            flops=flops, transcendentals=0, bytes_accessed=bytes_accessed),
    )(x, w1c, b1c, w2c, b2c, w3c, b3c)

    # (1, B) -> (B, 1) is a metadata-only reshape (no slice, no pad round-trip).
    return (out.reshape(B, 1),)


def init_params(key, d_in, hidden_sizes):
    """Mirrors the torch module's layer shapes.

    Weights are stored (out_features, in_features) (PyTorch layout); biases (out,).
    weight_norm(dim=None) is folded in: W_eff = g * V / ||V||_F, with torch's
    default init g = ||V||_F (identity at init).
    """
    dims = [d_in] + list(hidden_sizes) + [1]
    params = []
    for li in range(len(dims) - 1):
        key, kw, kb = jax.random.split(key, 3)
        fan_in, fan_out = dims[li], dims[li + 1]
        bound = 1.0 / jnp.sqrt(fan_in)
        v = jax.random.uniform(kw, (fan_out, fan_in), jnp.float32, -bound, bound)
        b = jax.random.uniform(kb, (fan_out,), jnp.float32, -bound, bound)
        g = jnp.sqrt(jnp.sum(v * v))                  # torch weight_norm default g
        w_eff = (g / jnp.sqrt(jnp.sum(v * v))) * v    # = v at init; kept for clarity
        params.append((w_eff, b))
    return params


def _reference_forward(x, params):
    (w1, b1), (w2, b2), (w3, b3) = params
    h = jnp.maximum(x @ w1.T + b1, 0.0)
    h = jnp.maximum(h @ w2.T + b2, 0.0)
    return h @ w3.T + b3


if __name__ == "__main__":
    # Synthetic config: hidden_size=16 -> MLP input = 32, hidden_size_mlp=[32, 32],
    # activation_mlp='relu', dropout_mlp irrelevant at inference.
    hidden_size = 16
    d_in = hidden_size * 2
    hidden_sizes = [32, 32]
    B = 16

    key = jax.random.PRNGKey(0)
    kx, kp, kx2 = jax.random.split(key, 3)
    x = jax.random.normal(kx, (B, d_in), jnp.float32)
    params = init_params(kp, d_in, hidden_sizes)

    # 1) Small batch, f32 compute: single grid step, no host-side passes on x.
    (out,) = pool_prediction_forward(x, params, compute_dtype=jnp.float32)
    out = jax.block_until_ready(out)
    ref = _reference_forward(x, params)
    assert out.shape == (B, 1), out.shape
    assert jnp.allclose(out, ref, atol=1e-4, rtol=1e-4), "f32 mismatch vs reference"

    # 2) Larger non-multiple batch with the default bf16 operands: exercises the
    #    two-step lane-tiled path with a masked partial tail block (no pad/slice).
    B2 = 1000
    x2 = jax.random.normal(kx2, (B2, d_in), jnp.float32)
    (out2,) = pool_prediction_forward(x2, params)     # bf16 default
    out2 = jax.block_until_ready(out2)
    ref2 = _reference_forward(x2, params)
    assert out2.shape == (B2, 1), out2.shape
    assert jnp.allclose(out2, ref2, atol=5e-2, rtol=5e-2), "bf16 mismatch vs reference"

    print("KERNEL_OK")
</pallas_src>

<mosaic_0001>
module attributes {stable_mosaic.version = 11 : i64} {
  func.func @_mlp_kernel(%arg0: i32, %arg1: memref<16x32xf32, #tpu.memory_space<vmem>>, %arg2: memref<32x32xf32, #tpu.memory_space<vmem>>, %arg3: memref<32x1xf32, #tpu.memory_space<vmem>>, %arg4: memref<32x32xf32, #tpu.memory_space<vmem>>, %arg5: memref<32x1xf32, #tpu.memory_space<vmem>>, %arg6: memref<32x1xf32, #tpu.memory_space<vmem>>, %arg7: memref<1x1xf32, #tpu.memory_space<smem>>, %arg8: memref<1x16xf32, #tpu.memory_space<vmem>>) attributes {dimension_semantics = [#tpu.dimension_semantics<parallel>], iteration_bounds = array<i64: 1>, scalar_prefetch = 0 : i64, scratch_operands = 0 : i64, tpu.core_type = #tpu.core_type<tc>, window_params = [{transform_indices = @transform_0, window_bounds = array<i64: 16, 32>}, {pipeline_mode = #tpu.pipeline_mode<synchronous>, transform_indices = @transform_1, window_bounds = array<i64: 32, 32>}, {pipeline_mode = #tpu.pipeline_mode<synchronous>, transform_indices = @transform_2, window_bounds = array<i64: 32, 1>}, {pipeline_mode = #tpu.pipeline_mode<synchronous>, transform_indices = @transform_3, window_bounds = array<i64: 32, 32>}, {pipeline_mode = #tpu.pipeline_mode<synchronous>, transform_indices = @transform_4, window_bounds = array<i64: 32, 1>}, {pipeline_mode = #tpu.pipeline_mode<synchronous>, transform_indices = @transform_5, window_bounds = array<i64: 32, 1>}, {transform_indices = @transform_6, window_bounds = array<i64: 1, 1>}, {transform_indices = @transform_7, window_bounds = array<i64: 1, 16>}]} {
    %c0 = arith.constant 0 : index
    %c0_0 = arith.constant 0 : index
    %0 = vector.load %arg2[%c0, %c0_0] : memref<32x32xf32, #tpu.memory_space<vmem>>, vector<32x32xf32>
    %c0_1 = arith.constant 0 : index
    %c0_2 = arith.constant 0 : index
    %1 = vector.load %arg1[%c0_1, %c0_2] : memref<16x32xf32, #tpu.memory_space<vmem>>, vector<16x32xf32>
    %cst = arith.constant dense<0.000000e+00> : vector<32x16xf32>
    %2 = tpu.matmul %0, %1, %cst {dimension_numbers = #tpu.dot_dimension_numbers<[1], [1], [0], [0], [0, 0, 1, 0], [], []>} : vector<32x32xf32>, vector<16x32xf32>, vector<32x16xf32> -> vector<32x16xf32>
    %c0_3 = arith.constant 0 : index
    %c0_4 = arith.constant 0 : index
    %3 = vector.load %arg3[%c0_3, %c0_4] : memref<32x1xf32, #tpu.memory_space<vmem>>, vector<32x1xf32>
    %4 = vector.broadcast %3 : vector<32x1xf32> to vector<32x16xf32>
    %5 = arith.addf %2, %4 : vector<32x16xf32>
    %cst_5 = arith.constant 0.000000e+00 : f32
    %6 = vector.broadcast %cst_5 : f32 to vector<32x16xf32>
    %7 = arith.maximumf %5, %6 : vector<32x16xf32>
    %c0_6 = arith.constant 0 : index
    %c0_7 = arith.constant 0 : index
    %8 = vector.load %arg4[%c0_6, %c0_7] : memref<32x32xf32, #tpu.memory_space<vmem>>, vector<32x32xf32>
    %cst_8 = arith.constant dense<0.000000e+00> : vector<32x16xf32>
    %9 = tpu.matmul %8, %7, %cst_8 {dimension_numbers = #tpu.dot_dimension_numbers<[1], [0], [0], [1], [0, 0, 1, 1], [], []>} : vector<32x32xf32>, vector<32x16xf32>, vector<32x16xf32> -> vector<32x16xf32>
    %c0_9 = arith.constant 0 : index
    %c0_10 = arith.constant 0 : index
    %10 = vector.load %arg5[%c0_9, %c0_10] : memref<32x1xf32, #tpu.memory_space<vmem>>, vector<32x1xf32>
    %11 = vector.broadcast %10 : vector<32x1xf32> to vector<32x16xf32>
    %12 = arith.addf %9, %11 : vector<32x16xf32>
    %cst_11 = arith.constant 0.000000e+00 : f32
    %13 = vector.broadcast %cst_11 : f32 to vector<32x16xf32>
    %14 = arith.maximumf %12, %13 : vector<32x16xf32>
    %c0_12 = arith.constant 0 : index
    %c0_13 = arith.constant 0 : index
    %15 = vector.load %arg6[%c0_12, %c0_13] : memref<32x1xf32, #tpu.memory_space<vmem>>, vector<32x1xf32>
    %16 = vector.broadcast %15 : vector<32x1xf32> to vector<32x16xf32>
    %17 = arith.mulf %14, %16 : vector<32x16xf32>
    %cst_14 = arith.constant dense<0.000000e+00> : vector<16xf32>
    %18 = vector.multi_reduction <add>, %17, %cst_14 [0] : vector<32x16xf32> to vector<16xf32>
    %19 = vector.shape_cast %18 : vector<16xf32> to vector<1x16xf32>
    %c0_15 = arith.constant 0 : index
    %c0_16 = arith.constant 0 : index
    %20 = memref.load %arg7[%c0_15, %c0_16] : memref<1x1xf32, #tpu.memory_space<smem>>
    %21 = vector.broadcast %20 : f32 to vector<1x16xf32>
    %22 = arith.addf %19, %21 : vector<1x16xf32>
    %c0_17 = arith.constant 0 : index
    %c0_18 = arith.constant 0 : index
    %23 = vector.load %arg8[%c0_17, %c0_18] : memref<1x16xf32, #tpu.memory_space<vmem>>, vector<1x16xf32>
    tpu.vector_store %arg8[%c0_17, %c0_18], %22 {strides = array<i32>} : memref<1x16xf32, #tpu.memory_space<vmem>>, vector<1x16xf32>,
    return
  }
  func.func @transform_0(%arg0: i32) -> (i32, i32) {
    %c0_i32 = arith.constant 0 : i32
    %c0_i32_0 = arith.constant 0 : i32
    return %arg0, %c0_i32 : i32, i32
  }
  func.func @transform_1(%arg0: i32) -> (i32, i32) {
    %c0_i32 = arith.constant 0 : i32
    %c0_i32_0 = arith.constant 0 : i32
    %c0_i32_1 = arith.constant 0 : i32
    return %c0_i32, %c0_i32_0 : i32, i32
  }
  func.func @transform_2(%arg0: i32) -> (i32, i32) {
    %c0_i32 = arith.constant 0 : i32
    %c0_i32_0 = arith.constant 0 : i32
    %c0_i32_1 = arith.constant 0 : i32
    return %c0_i32, %c0_i32_0 : i32, i32
  }
  func.func @transform_3(%arg0: i32) -> (i32, i32) {
    %c0_i32 = arith.constant 0 : i32
    %c0_i32_0 = arith.constant 0 : i32
    %c0_i32_1 = arith.constant 0 : i32
    return %c0_i32, %c0_i32_0 : i32, i32
  }
  func.func @transform_4(%arg0: i32) -> (i32, i32) {
    %c0_i32 = arith.constant 0 : i32
    %c0_i32_0 = arith.constant 0 : i32
    %c0_i32_1 = arith.constant 0 : i32
    return %c0_i32, %c0_i32_0 : i32, i32
  }
  func.func @transform_5(%arg0: i32) -> (i32, i32) {
    %c0_i32 = arith.constant 0 : i32
    %c0_i32_0 = arith.constant 0 : i32
    %c0_i32_1 = arith.constant 0 : i32
    return %c0_i32, %c0_i32_0 : i32, i32
  }
  func.func @transform_6(%arg0: i32) -> (i32, i32) {
    %c0_i32 = arith.constant 0 : i32
    %c0_i32_0 = arith.constant 0 : i32
    %c0_i32_1 = arith.constant 0 : i32
    return %c0_i32, %c0_i32_0 : i32, i32
  }
  func.func @transform_7(%arg0: i32) -> (i32, i32) {
    %c0_i32 = arith.constant 0 : i32
    %c0_i32_0 = arith.constant 0 : i32
    return %c0_i32, %arg0 : i32, i32
  }
}

</mosaic_0001>

<bundles_post_ra>
// kernel: tpu_custom_call.1
= control target key start
LH: loop header
LB: loop body
LE: loop exit
PB: predicated region body
PF: predicated region fallthrough
CT: control target
= control target key end

     0   :  { %vm58_vm0 = vcmask 261120   ;;  %v293_v2 = vmov 0   ;;  %s419_s0 = inlined_call_operand.vmem [shape: f32[16,32], index: 0, kind: input, shape index: {}]   ;;  %s420_s1 = inlined_call_operand.vmem [shape: f32[32,32], index: 1, kind: input, shape index: {}]   ;;  %s421_s2 = inlined_call_operand.vmem [shape: f32[32,1], index: 2, kind: input, shape index: {}]   ;;  %s422_s3 = inlined_call_operand.vmem [shape: f32[32,32], index: 3, kind: input, shape index: {}]   ;;  %s423_s4 = inlined_call_operand.vmem [shape: f32[32,1], index: 4, kind: input, shape index: {}]   ;;  %s424_s5 = inlined_call_operand.vmem [shape: f32[32,1], index: 5, kind: input, shape index: {}]   ;;  %s425_s6 = inlined_call_operand.<no memory space> [shape: f32[1,1], index: 6, kind: input, shape index: {}]   ;;  %s426_s7 = inlined_call_operand.hbm [shape: f32[1,16], index: 7, kind: output, shape index: {}]  }
   0x1   :  { %v33_v0 = vld [vmem:[%s419_s0 + $0x8] sm:$0xff]  ;;  %v37_v1 = vld [vmem:[%s421_s2 + $0x18] sm:$0xff]  ;;  %264 = vset.pattern.permute.xlu0 %v293_v2  ;;  %v32_v4 = vld [vmem:[%s419_s0] sm:$0xff]  ;;  %265 = vset.pattern.permute.xlu1 %v293_v2 }
   0x2   :  { %256 = vmatpush.xpose.msk.msra.mxu2 %vm58_vm0, %v33_v0  ;;  %v35_v3 = vld [vmem:[%s421_s2 + $0x8] sm:$0xff]  ;;  %55 = vperm.xlu0 %264, %v37_v1  }
   0x3   :  { %246 = vmatpush.xpose.msk.msra.mxu0 %vm58_vm0, %v33_v0  ;;  %266 = vset.pattern.permute.xlu2 %v293_v2 }
   0x4   :  { %45 = vperm.xlu1 %265, %v35_v3  }
   0x5   :  { %13 = vsyncpa [#allocation4], 0  ;;  %v30_v5 = vld [vmem:[%s420_s1 + $0x10] sm:$0xff]  ;;  %v28_v6 = vld [vmem:[%s420_s1] sm:$0xff]  ;;  %vm211_vm1 = vcmask 130048   ;;  %s294_s17 = smov [#allocation3]  }
   0x6   :  { %257 = vmatpush.xpose.msk.msra.mxu2 %vm58_vm0, %v32_v4  ;;  %v36_v7 = vld [vmem:[%s421_s2 + $0x10] sm:$0xff]  ;;  %v34_v8 = vld [vmem:[%s421_s2] sm:$0xff]  ;;  %v31_v9 = vld [vmem:[%s420_s1 + $0x18] sm:$0xff]  ;;  %s235_s18 = sshll.u32 %s294_s17, 4  ;;  %s237_s21 = sshll.u32 %s426_s7, 4  ;;  %vm228_vm2 = vcmask 122880   ;;  %s236_s18 = int_to_ptr.vmem [resolvable:$true] %s235_s18  ;;  %s238_s21 = int_to_ptr.hbm [resolvable:$true] %s237_s21 }
   0x7   :  { %247 = vmatpush.xpose.msk.msra.mxu0 %vm58_vm0, %v32_v4  ;;  %v29_v10 = vld [vmem:[%s420_s1 + $0x8] sm:$0xff]  ;;  %v116_v11 = vld [vmem:[%s423_s4 + $0x10] sm:$0xff]  ;;  %v117_v12 = vld [vmem:[%s423_s4 + $0x18] sm:$0xff] }
   0x8   :  { %v184_v13 = vld [vmem:[%s424_s5 + $0x8] sm:$0xff]  ;;  %v185_v14 = vld [vmem:[%s424_s5 + $0x10] sm:$0xff]  ;;  %v114_v15 = vld [vmem:[%s423_s4] sm:$0xff] }
   0x9   :  { %250 = vmatmul.msk.f32.vlgmr.msra.gmra.mxu2 %vm58_vm0, %v30_v5  ;;  %120 = vperm.xlu2 %266, %v114_v15   ;;  %v115_v16 = vld [vmem:[%s423_s4 + $0x8] sm:$0xff]  ;;  %v183_v21 = vld [vmem:[%s424_s5] sm:$0xff]  ;;  %v186_v29 = vld [vmem:[%s424_s5 + $0x18] sm:$0xff] }
   0xa   :  { %248 = vmatmul.msk.f32.vlgmr.msra.gmra.mxu0 %vm58_vm0, %v28_v6  ;;  %50 = vperm.xlu0 %264, %v36_v7   ;;  %v110_v35 = vld [vmem:[%s422_s3] sm:$0xff]  ;;  %v112_v36 = vld [vmem:[%s422_s3 + $0x10] sm:$0xff]  ;;  %v111_v37 = vld [vmem:[%s422_s3 + $0x8] sm:$0xff] }
   0xb   :  { %v113_v38 = vld [vmem:[%s422_s3 + $0x18] sm:$0xff] }
   0xc   :  { %40 = vperm.xlu1 %265, %v34_v8  }
  0x11   :  { %251 = vmatmul.msk.f32.gmra.mxu2 %vm58_vm0, %v31_v9  ;;  %125 = vperm.xlu2 %266, %v115_v16  }
  0x12   :  { %249 = vmatmul.msk.f32.gmra.mxu0 %vm58_vm0, %v29_v10  ;;  %130 = vperm.xlu0 %264, %v116_v11   ;;  %v226_v11 = vstv %s425_s6 }
  0x14   :  { %135 = vperm.xlu1 %265, %v117_v12  }
  0x19   :  { %189 = vperm.xlu2 %266, %v183_v21  }
  0x1a   :  { %194 = vperm.xlu0 %264, %v184_v13  }
  0x1c   :  { %199 = vperm.xlu1 %265, %v185_v14  }
  0x21   :  { %204 = vperm.xlu2 %266, %v186_v29  }
  0x63   :  { %v121_v39 = vpop.permute.xlu2 %120 }
  0x6b   :  { %v126_v40 = vpop.permute.xlu2 %125 }
  0x73   :  { %v190_v48 = vpop.permute.xlu2 %189 }
  0x74   :  { %v56_v17 = vpop.permute.xlu0 %55 }
  0x76   :  { %v46_v20 = vpop.permute.xlu1 %45 }
  0x7b   :  { %v205_v0 = vpop.permute.xlu2 %204 }
  0x7c   :  { %v51_v22 = vpop.permute.xlu0 %50 }
  0x7e   :  { %v41_v30 = vpop.permute.xlu1 %40 }
  0x84   :  { %v131_v42 = vpop.permute.xlu0 %130 }
  0x86   :  { %v136_v44 = vpop.permute.xlu1 %135 }
  0x87   :  { %v94_v18 = vpop.f32.mrf.mxu0 }
  0x88   :  { %v95_v31 = vadd.f32 %v94_v18, %v41_v30 }
  0x8a   :  { %v106_v34 = vmax.f32 %v95_v31, 0.0 }
  0x8c   :  { %v100_v19 = vpop.f32.mrf.mxu2  ;;  %v195_v54 = vpop.permute.xlu0 %194 }
  0x8d   :  { %v101_v25 = vadd.f32 %v100_v19, %v51_v22 }
  0x8e   :  { %v200_v56 = vpop.permute.xlu1 %199 }
  0x8f   :  { %v97_v23 = vpop.f32.mrf.mxu0  ;;  %v108_v32 = vmax.f32 %v101_v25, 0.0 }
  0x90   :  { %v98_v27 = vadd.f32 %v97_v23, %v46_v20 }
  0x92   :  { %v107_v33 = vmax.f32 %v98_v27, 0.0 }
  0x94   :  { %v103_v24 = vpop.f32.mrf.mxu2 }
  0x95   :  { %v104_v26 = vadd.f32 %v103_v24, %v56_v17 }
  0x97   :  { %v109_v28 = vmax.f32 %v104_v26, 0.0 }
  0x99   :  { %162 = vmatpush.msra.mxu1 %v109_v28  ;;  %258 = vmatpush.msra.mxu3 %v109_v28 }
  0x9b   :  { %163 = vmatpush.msra.mxu1 %v108_v32  ;;  %259 = vmatpush.msra.mxu3 %v108_v32 }
  0x9d   :  { %164 = vmatpush.msra.mxu1 %v107_v33  ;;  %260 = vmatpush.msra.mxu3 %v107_v33 }
  0x9f   :  { %165 = vmatpush.msra.mxu1 %v106_v34  ;;  %261 = vmatpush.msra.mxu3 %v106_v34 }
  0xa0   :  { %252 = vmatmul.msk.f32.vlgmr.msra.gmra.mxu1 %vm58_vm0, %v110_v35  ;;  %254 = vmatmul.msk.f32.vlgmr.msra.gmra.mxu3 %vm58_vm0, %v112_v36 }
  0xa8   :  { %253 = vmatmul.msk.f32.gmra.mxu1 %vm58_vm0, %v111_v37  ;;  %255 = vmatmul.msk.f32.gmra.mxu3 %vm58_vm0, %v113_v38 }
 0x11d   :  { %v167_v41 = vpop.f32.mrf.mxu1 }
 0x11e   :  { %v168_v43 = vadd.f32 %v167_v41, %v121_v39 }
 0x120   :  { %v179_v46 = vmax.f32 %v168_v43, 0.0 }
 0x122   :  { %v207_v51 = vmul.f32 %v190_v48, %v179_v46 }
 0x123   :  { %v173_v45 = vpop.f32.mrf.mxu3 }
 0x124   :  { %v174_v47 = vadd.f32 %v173_v45, %v131_v42  ;;  %v212_v58 = vsel %vm211_vm1, %v207_v51, 0.0 }
 0x125   :  { %v170_v49 = vpop.f32.mrf.mxu1 }
 0x126   :  { %v171_v50 = vadd.f32 %v170_v49, %v126_v40  ;;  %v181_v52 = vmax.f32 %v174_v47, 0.0 }
 0x128   :  { %v180_v53 = vmax.f32 %v171_v50, 0.0  ;;  %v209_v59 = vmul.f32 %v200_v56, %v181_v52 }
 0x12a   :  { %v208_v55 = vmul.f32 %v195_v54, %v180_v53  ;;  %v215_v1 = vsel %vm211_vm1, %v209_v59, 0.0 }
 0x12b   :  { %v176_v57 = vpop.f32.mrf.mxu3 }
 0x12c   :  { %v213_v60 = vsel %vm211_vm1, %v208_v55, 0.0  ;;  %v177_v61 = vadd.f32 %v176_v57, %v136_v44 }
 0x12d   :  { %v214_v62 = vadd.f32 %v213_v60, %v212_v58 }
 0x12e   :  { %v182_v63 = vmax.f32 %v177_v61, 0.0 }
 0x12f   :  { %v216_v3 = vadd.f32 %v215_v1, %v214_v62 }
 0x130   :  { %v210_v2 = vmul.f32 %v205_v0, %v182_v63 }
 0x132   :  { %v217_v4 = vsel %vm211_vm1, %v210_v2, 0.0 }
 0x133   :  { %v218_v5 = vadd.f32 %v217_v4, %v216_v3 }
 0x135   :  { %v219_v6 = vrot.slane %v218_v5, 4 }
 0x137   :  { %v220_v7 = vadd.f32 %v219_v6, %v218_v5 }
 0x139   :  { %v221_v8 = vrot.slane %v220_v7, 2 }
 0x13b   :  { %v222_v9 = vadd.f32 %v221_v8, %v220_v7 }
 0x13d   :  { %v223_v10 = vrot.slane %v222_v9, 1 }
 0x13f   :  { %v224_v12 = vadd.f32 %v223_v10, %v222_v9 }
 0x141   :  { %v227_v13 = vadd.f32 %v226_v11, %v224_v12 }
 0x143   :  { %229 = vst.msk [vmem:[#allocation3] sm:$0x1] %vm228_vm2, %v227_v13 }
 0x144   :  { %240 = dma.vmem_to_hbm [thread:$0]  %s236_s18, 16, %s238_s21, [#allocation4]  }
 0x145   :  { %291 = dma.done.wait [#allocation4], 16  }
 0x146   :  { %292 = vsyncadd [#allocation4], 4294967280 }
 0x147   :  { %245 = vsyncpa [#allocation4], 1 }

</bundles_post_ra>
